<compile_context>
chip_gen: v5e
topology: v5e:2x2
jax: 0.10.0
libtpu: 0.0.40
codegen_flags: <defaults>
</compile_context>

<pallas_src>
import jax
import jax.numpy as jnp
from jax.experimental import pallas as pl
from jax.experimental.pallas import tpu as pltpu


def _cond_conv_kernel(p_ref, w_ref, b_ref, o_ref):
    """One lane-dense output block of the conv.

    p_ref: (K, BM)    im2col patches, spatial (n,h,w) on lanes.
    w_ref: (Cout, K)  weight-normed conv weights as a matrix.
    b_ref: (Cout, 1)  bias.
    o_ref: (Cout, BM) transposed output block (spatial on lanes).
    """
    cout, k_dim = w_ref.shape
    bm = o_ref.shape[-1]

    w = w_ref[...]                               # (Cout, K)  ~1 vreg
    p = p_ref[...]                               # (K, BM)

    acc = jnp.zeros((cout, bm), dtype=jnp.float32)
    # VPU broadcast-FMA: one (Cout,1) x (1,BM) outer-product accumulate per
    # reduction tap.  Keeps the tiny-channel conv off the MXU entirely.
    for k in range(k_dim):
        acc = acc + w[:, k:k + 1] * p[k:k + 1, :]

    acc = acc + b_ref[...]                       # bias, lane-broadcast
    o_ref[...] = jnp.maximum(acc, 0.0).astype(o_ref.dtype)   # ReLU


def cond_conv_layer(x_nchw, v, g, bias, *, kernel_size=3, padding=1,
                    block_m=256):
    """Forward pass of CondConvLayer: ReLU(weight_norm_conv2d(x) + b).

    x_nchw: (N, Cin, H, W) float32
    v:      (Cout, Cin, KH, KW) weight-norm direction (torch OIHW)
    g:      (Cout,)             weight-norm magnitude
    bias:   (Cout,)
    """
    N, Cin, H, W = x_nchw.shape
    Cout = v.shape[0]
    KH = KW = kernel_size
    Ho = H + 2 * padding - KH + 1                # general, not just "same"
    Wo = W + 2 * padding - KW + 1
    K = Cin * KH * KW
    M = N * Ho * Wo

    # --- weight-norm reparameterization (parameter glue, plain JAX) ---
    # w = g * v / ||v||  (no epsilon, matching PyTorch's weight_norm)
    v_norm = jnp.sqrt(jnp.sum(v * v, axis=(1, 2, 3), keepdims=True))
    w_oihw = (g.reshape(-1, 1, 1, 1) / v_norm) * v              # (Cout,Cin,KH,KW)
    w_mat = w_oihw.reshape(Cout, K)                             # k = (ci,kh,kw)

    # --- im2col (XLA glue; pad is consumed by the gather, activation stays
    #     NCHW throughout — no NHWC transposes) ---
    x_pad = jnp.pad(
        x_nchw, ((0, 0), (0, 0), (padding, padding), (padding, padding)))
    taps = [x_pad[:, :, kh:kh + Ho, kw:kw + Wo]
            for kh in range(KH) for kw in range(KW)]            # (N,Cin,Ho,Wo) each
    patches = jnp.stack(taps, axis=2)                           # (N,Cin,T,Ho,Wo)
    patches = patches.transpose(1, 2, 0, 3, 4).reshape(K, M)    # (K, M), k=(ci,kh,kw)

    # --- lane-dense M tiling: block is a multiple of 128 lanes; at the test
    #     shapes M=512 -> 2 parallel blocks (feeds both v7x TensorCores) ---
    bm = max(128, (min(block_m, M) + 127) // 128 * 128)
    grid_m = pl.cdiv(M, bm)
    Mp = grid_m * bm
    if Mp != M:
        patches = jnp.pad(patches, ((0, 0), (0, Mp - M)))

    out_t = pl.pallas_call(
        _cond_conv_kernel,
        out_shape=jax.ShapeDtypeStruct((Cout, Mp), x_nchw.dtype),
        grid_spec=pltpu.PrefetchScalarGridSpec(
            num_scalar_prefetch=0,
            grid=(grid_m,),
            in_specs=[
                pl.BlockSpec((K, bm), lambda m: (0, m)),        # patches block
                pl.BlockSpec((Cout, K), lambda m: (0, 0)),      # weights (resident)
                pl.BlockSpec((Cout, 1), lambda m: (0, 0)),      # bias
            ],
            out_specs=pl.BlockSpec((Cout, bm), lambda m: (0, m)),
        ),
        compiler_params=pltpu.CompilerParams(
            dimension_semantics=("parallel",)),
    )(patches, w_mat, bias.reshape(Cout, 1))

    # --- un-transpose the tiny (Cout, M) result back to NCHW ---
    out = out_t[:, :M].reshape(Cout, N, Ho, Wo).transpose(1, 0, 2, 3)
    return out


def _reference(x_nchw, v, g, bias, padding=1):
    """Pure-JAX reference (lax conv) for correctness checking."""
    v_norm = jnp.sqrt(jnp.sum(v * v, axis=(1, 2, 3), keepdims=True))
    w = (g.reshape(-1, 1, 1, 1) / v_norm) * v                   # OIHW
    out = jax.lax.conv_general_dilated(
        x_nchw, w, window_strides=(1, 1),
        padding=((padding, padding), (padding, padding)),
        dimension_numbers=("NCHW", "OIHW", "NCHW"))
    return jnp.maximum(out + bias.reshape(1, -1, 1, 1), 0.0)


if __name__ == "__main__":
    key = jax.random.PRNGKey(0)
    k_x, k_v, k_g, k_b = jax.random.split(key, 4)

    # Small shapes consistent with the module: batch=2, in_ch=4, out_ch=8, 16x16.
    N, Cin, Cout, H, W = 2, 4, 8, 16, 16
    KH = KW = 3

    x = jax.random.normal(k_x, (N, Cin, H, W), dtype=jnp.float32)
    v = jax.random.normal(k_v, (Cout, Cin, KH, KW), dtype=jnp.float32) * 0.1
    g = jax.random.uniform(k_g, (Cout,), dtype=jnp.float32, minval=0.5, maxval=1.5)
    b = jax.random.normal(k_b, (Cout,), dtype=jnp.float32) * 0.1

    fwd = jax.jit(cond_conv_layer)
    out = jax.block_until_ready(fwd(x, v, g, b))

    ref = jax.block_until_ready(_reference(x, v, g, b))
    assert out.shape == (N, Cout, H, W), out.shape
    assert jnp.allclose(out, ref, atol=1e-4, rtol=1e-4), float(
        jnp.max(jnp.abs(out - ref)))

    print("KERNEL_OK")
</pallas_src>

<mosaic_0001>
module attributes {stable_mosaic.version = 11 : i64} {
  func.func @_cond_conv_kernel(%arg0: i32, %arg1: memref<36x256xf32, #tpu.memory_space<vmem>>, %arg2: memref<8x36xf32, #tpu.memory_space<vmem>>, %arg3: memref<8x1xf32, #tpu.memory_space<vmem>>, %arg4: memref<8x256xf32, #tpu.memory_space<vmem>>) attributes {dimension_semantics = [#tpu.dimension_semantics<parallel>], iteration_bounds = array<i64: 2>, scalar_prefetch = 0 : i64, scratch_operands = 0 : i64, tpu.core_type = #tpu.core_type<tc>, window_params = [{transform_indices = @transform_0, window_bounds = array<i64: 36, 256>}, {pipeline_mode = #tpu.pipeline_mode<synchronous>, transform_indices = @transform_1, window_bounds = array<i64: 8, 36>}, {pipeline_mode = #tpu.pipeline_mode<synchronous>, transform_indices = @transform_2, window_bounds = array<i64: 8, 1>}, {transform_indices = @transform_3, window_bounds = array<i64: 8, 256>}]} {
    %c0 = arith.constant 0 : index
    %c0_0 = arith.constant 0 : index
    %0 = vector.load %arg2[%c0, %c0_0] : memref<8x36xf32, #tpu.memory_space<vmem>>, vector<8x36xf32>
    %c0_1 = arith.constant 0 : index
    %c0_2 = arith.constant 0 : index
    %1 = vector.load %arg1[%c0_1, %c0_2] : memref<36x256xf32, #tpu.memory_space<vmem>>, vector<36x256xf32>
    %cst = arith.constant 0.000000e+00 : f32
    %2 = vector.broadcast %cst : f32 to vector<8x256xf32>
    %3 = vector.extract_strided_slice %0 {offsets = [0, 0], sizes = [8, 1], strides = [1, 1]} : vector<8x36xf32> to vector<8x1xf32>
    %4 = vector.extract_strided_slice %1 {offsets = [0, 0], sizes = [1, 256], strides = [1, 1]} : vector<36x256xf32> to vector<1x256xf32>
    %5 = vector.broadcast %3 : vector<8x1xf32> to vector<8x256xf32>
    %6 = vector.broadcast %4 : vector<1x256xf32> to vector<8x256xf32>
    %7 = arith.mulf %5, %6 : vector<8x256xf32>
    %8 = arith.addf %2, %7 : vector<8x256xf32>
    %9 = vector.extract_strided_slice %0 {offsets = [0, 1], sizes = [8, 1], strides = [1, 1]} : vector<8x36xf32> to vector<8x1xf32>
    %10 = vector.extract_strided_slice %1 {offsets = [1, 0], sizes = [1, 256], strides = [1, 1]} : vector<36x256xf32> to vector<1x256xf32>
    %11 = vector.broadcast %9 : vector<8x1xf32> to vector<8x256xf32>
    %12 = vector.broadcast %10 : vector<1x256xf32> to vector<8x256xf32>
    %13 = arith.mulf %11, %12 : vector<8x256xf32>
    %14 = arith.addf %8, %13 : vector<8x256xf32>
    %15 = vector.extract_strided_slice %0 {offsets = [0, 2], sizes = [8, 1], strides = [1, 1]} : vector<8x36xf32> to vector<8x1xf32>
    %16 = vector.extract_strided_slice %1 {offsets = [2, 0], sizes = [1, 256], strides = [1, 1]} : vector<36x256xf32> to vector<1x256xf32>
    %17 = vector.broadcast %15 : vector<8x1xf32> to vector<8x256xf32>
    %18 = vector.broadcast %16 : vector<1x256xf32> to vector<8x256xf32>
    %19 = arith.mulf %17, %18 : vector<8x256xf32>
    %20 = arith.addf %14, %19 : vector<8x256xf32>
    %21 = vector.extract_strided_slice %0 {offsets = [0, 3], sizes = [8, 1], strides = [1, 1]} : vector<8x36xf32> to vector<8x1xf32>
    %22 = vector.extract_strided_slice %1 {offsets = [3, 0], sizes = [1, 256], strides = [1, 1]} : vector<36x256xf32> to vector<1x256xf32>
    %23 = vector.broadcast %21 : vector<8x1xf32> to vector<8x256xf32>
    %24 = vector.broadcast %22 : vector<1x256xf32> to vector<8x256xf32>
    %25 = arith.mulf %23, %24 : vector<8x256xf32>
    %26 = arith.addf %20, %25 : vector<8x256xf32>
    %27 = vector.extract_strided_slice %0 {offsets = [0, 4], sizes = [8, 1], strides = [1, 1]} : vector<8x36xf32> to vector<8x1xf32>
    %28 = vector.extract_strided_slice %1 {offsets = [4, 0], sizes = [1, 256], strides = [1, 1]} : vector<36x256xf32> to vector<1x256xf32>
    %29 = vector.broadcast %27 : vector<8x1xf32> to vector<8x256xf32>
    %30 = vector.broadcast %28 : vector<1x256xf32> to vector<8x256xf32>
    %31 = arith.mulf %29, %30 : vector<8x256xf32>
    %32 = arith.addf %26, %31 : vector<8x256xf32>
    %33 = vector.extract_strided_slice %0 {offsets = [0, 5], sizes = [8, 1], strides = [1, 1]} : vector<8x36xf32> to vector<8x1xf32>
    %34 = vector.extract_strided_slice %1 {offsets = [5, 0], sizes = [1, 256], strides = [1, 1]} : vector<36x256xf32> to vector<1x256xf32>
    %35 = vector.broadcast %33 : vector<8x1xf32> to vector<8x256xf32>
    %36 = vector.broadcast %34 : vector<1x256xf32> to vector<8x256xf32>
    %37 = arith.mulf %35, %36 : vector<8x256xf32>
    %38 = arith.addf %32, %37 : vector<8x256xf32>
    %39 = vector.extract_strided_slice %0 {offsets = [0, 6], sizes = [8, 1], strides = [1, 1]} : vector<8x36xf32> to vector<8x1xf32>
    %40 = vector.extract_strided_slice %1 {offsets = [6, 0], sizes = [1, 256], strides = [1, 1]} : vector<36x256xf32> to vector<1x256xf32>
    %41 = vector.broadcast %39 : vector<8x1xf32> to vector<8x256xf32>
    %42 = vector.broadcast %40 : vector<1x256xf32> to vector<8x256xf32>
    %43 = arith.mulf %41, %42 : vector<8x256xf32>
    %44 = arith.addf %38, %43 : vector<8x256xf32>
    %45 = vector.extract_strided_slice %0 {offsets = [0, 7], sizes = [8, 1], strides = [1, 1]} : vector<8x36xf32> to vector<8x1xf32>
    %46 = vector.extract_strided_slice %1 {offsets = [7, 0], sizes = [1, 256], strides = [1, 1]} : vector<36x256xf32> to vector<1x256xf32>
    %47 = vector.broadcast %45 : vector<8x1xf32> to vector<8x256xf32>
    %48 = vector.broadcast %46 : vector<1x256xf32> to vector<8x256xf32>
    %49 = arith.mulf %47, %48 : vector<8x256xf32>
    %50 = arith.addf %44, %49 : vector<8x256xf32>
    %51 = vector.extract_strided_slice %0 {offsets = [0, 8], sizes = [8, 1], strides = [1, 1]} : vector<8x36xf32> to vector<8x1xf32>
    %52 = vector.extract_strided_slice %1 {offsets = [8, 0], sizes = [1, 256], strides = [1, 1]} : vector<36x256xf32> to vector<1x256xf32>
    %53 = vector.broadcast %51 : vector<8x1xf32> to vector<8x256xf32>
    %54 = vector.broadcast %52 : vector<1x256xf32> to vector<8x256xf32>
    %55 = arith.mulf %53, %54 : vector<8x256xf32>
    %56 = arith.addf %50, %55 : vector<8x256xf32>
    %57 = vector.extract_strided_slice %0 {offsets = [0, 9], sizes = [8, 1], strides = [1, 1]} : vector<8x36xf32> to vector<8x1xf32>
    %58 = vector.extract_strided_slice %1 {offsets = [9, 0], sizes = [1, 256], strides = [1, 1]} : vector<36x256xf32> to vector<1x256xf32>
    %59 = vector.broadcast %57 : vector<8x1xf32> to vector<8x256xf32>
    %60 = vector.broadcast %58 : vector<1x256xf32> to vector<8x256xf32>
    %61 = arith.mulf %59, %60 : vector<8x256xf32>
    %62 = arith.addf %56, %61 : vector<8x256xf32>
    %63 = vector.extract_strided_slice %0 {offsets = [0, 10], sizes = [8, 1], strides = [1, 1]} : vector<8x36xf32> to vector<8x1xf32>
    %64 = vector.extract_strided_slice %1 {offsets = [10, 0], sizes = [1, 256], strides = [1, 1]} : vector<36x256xf32> to vector<1x256xf32>
    %65 = vector.broadcast %63 : vector<8x1xf32> to vector<8x256xf32>
    %66 = vector.broadcast %64 : vector<1x256xf32> to vector<8x256xf32>
    %67 = arith.mulf %65, %66 : vector<8x256xf32>
    %68 = arith.addf %62, %67 : vector<8x256xf32>
    %69 = vector.extract_strided_slice %0 {offsets = [0, 11], sizes = [8, 1], strides = [1, 1]} : vector<8x36xf32> to vector<8x1xf32>
    %70 = vector.extract_strided_slice %1 {offsets = [11, 0], sizes = [1, 256], strides = [1, 1]} : vector<36x256xf32> to vector<1x256xf32>
    %71 = vector.broadcast %69 : vector<8x1xf32> to vector<8x256xf32>
    %72 = vector.broadcast %70 : vector<1x256xf32> to vector<8x256xf32>
    %73 = arith.mulf %71, %72 : vector<8x256xf32>
    %74 = arith.addf %68, %73 : vector<8x256xf32>
    %75 = vector.extract_strided_slice %0 {offsets = [0, 12], sizes = [8, 1], strides = [1, 1]} : vector<8x36xf32> to vector<8x1xf32>
    %76 = vector.extract_strided_slice %1 {offsets = [12, 0], sizes = [1, 256], strides = [1, 1]} : vector<36x256xf32> to vector<1x256xf32>
    %77 = vector.broadcast %75 : vector<8x1xf32> to vector<8x256xf32>
    %78 = vector.broadcast %76 : vector<1x256xf32> to vector<8x256xf32>
    %79 = arith.mulf %77, %78 : vector<8x256xf32>
    %80 = arith.addf %74, %79 : vector<8x256xf32>
    %81 = vector.extract_strided_slice %0 {offsets = [0, 13], sizes = [8, 1], strides = [1, 1]} : vector<8x36xf32> to vector<8x1xf32>
    %82 = vector.extract_strided_slice %1 {offsets = [13, 0], sizes = [1, 256], strides = [1, 1]} : vector<36x256xf32> to vector<1x256xf32>
    %83 = vector.broadcast %81 : vector<8x1xf32> to vector<8x256xf32>
    %84 = vector.broadcast %82 : vector<1x256xf32> to vector<8x256xf32>
    %85 = arith.mulf %83, %84 : vector<8x256xf32>
    %86 = arith.addf %80, %85 : vector<8x256xf32>
    %87 = vector.extract_strided_slice %0 {offsets = [0, 14], sizes = [8, 1], strides = [1, 1]} : vector<8x36xf32> to vector<8x1xf32>
    %88 = vector.extract_strided_slice %1 {offsets = [14, 0], sizes = [1, 256], strides = [1, 1]} : vector<36x256xf32> to vector<1x256xf32>
    %89 = vector.broadcast %87 : vector<8x1xf32> to vector<8x256xf32>
    %90 = vector.broadcast %88 : vector<1x256xf32> to vector<8x256xf32>
    %91 = arith.mulf %89, %90 : vector<8x256xf32>
    %92 = arith.addf %86, %91 : vector<8x256xf32>
    %93 = vector.extract_strided_slice %0 {offsets = [0, 15], sizes = [8, 1], strides = [1, 1]} : vector<8x36xf32> to vector<8x1xf32>
    %94 = vector.extract_strided_slice %1 {offsets = [15, 0], sizes = [1, 256], strides = [1, 1]} : vector<36x256xf32> to vector<1x256xf32>
    %95 = vector.broadcast %93 : vector<8x1xf32> to vector<8x256xf32>
    %96 = vector.broadcast %94 : vector<1x256xf32> to vector<8x256xf32>
    %97 = arith.mulf %95, %96 : vector<8x256xf32>
    %98 = arith.addf %92, %97 : vector<8x256xf32>
    %99 = vector.extract_strided_slice %0 {offsets = [0, 16], sizes = [8, 1], strides = [1, 1]} : vector<8x36xf32> to vector<8x1xf32>
    %100 = vector.extract_strided_slice %1 {offsets = [16, 0], sizes = [1, 256], strides = [1, 1]} : vector<36x256xf32> to vector<1x256xf32>
    %101 = vector.broadcast %99 : vector<8x1xf32> to vector<8x256xf32>
    %102 = vector.broadcast %100 : vector<1x256xf32> to vector<8x256xf32>
    %103 = arith.mulf %101, %102 : vector<8x256xf32>
    %104 = arith.addf %98, %103 : vector<8x256xf32>
    %105 = vector.extract_strided_slice %0 {offsets = [0, 17], sizes = [8, 1], strides = [1, 1]} : vector<8x36xf32> to vector<8x1xf32>
    %106 = vector.extract_strided_slice %1 {offsets = [17, 0], sizes = [1, 256], strides = [1, 1]} : vector<36x256xf32> to vector<1x256xf32>
    %107 = vector.broadcast %105 : vector<8x1xf32> to vector<8x256xf32>
    %108 = vector.broadcast %106 : vector<1x256xf32> to vector<8x256xf32>
    %109 = arith.mulf %107, %108 : vector<8x256xf32>
    %110 = arith.addf %104, %109 : vector<8x256xf32>
    %111 = vector.extract_strided_slice %0 {offsets = [0, 18], sizes = [8, 1], strides = [1, 1]} : vector<8x36xf32> to vector<8x1xf32>
    %112 = vector.extract_strided_slice %1 {offsets = [18, 0], sizes = [1, 256], strides = [1, 1]} : vector<36x256xf32> to vector<1x256xf32>
    %113 = vector.broadcast %111 : vector<8x1xf32> to vector<8x256xf32>
    %114 = vector.broadcast %112 : vector<1x256xf32> to vector<8x256xf32>
    %115 = arith.mulf %113, %114 : vector<8x256xf32>
    %116 = arith.addf %110, %115 : vector<8x256xf32>
    %117 = vector.extract_strided_slice %0 {offsets = [0, 19], sizes = [8, 1], strides = [1, 1]} : vector<8x36xf32> to vector<8x1xf32>
    %118 = vector.extract_strided_slice %1 {offsets = [19, 0], sizes = [1, 256], strides = [1, 1]} : vector<36x256xf32> to vector<1x256xf32>
    %119 = vector.broadcast %117 : vector<8x1xf32> to vector<8x256xf32>
    %120 = vector.broadcast %118 : vector<1x256xf32> to vector<8x256xf32>
    %121 = arith.mulf %119, %120 : vector<8x256xf32>
    %122 = arith.addf %116, %121 : vector<8x256xf32>
    %123 = vector.extract_strided_slice %0 {offsets = [0, 20], sizes = [8, 1], strides = [1, 1]} : vector<8x36xf32> to vector<8x1xf32>
    %124 = vector.extract_strided_slice %1 {offsets = [20, 0], sizes = [1, 256], strides = [1, 1]} : vector<36x256xf32> to vector<1x256xf32>
    %125 = vector.broadcast %123 : vector<8x1xf32> to vector<8x256xf32>
    %126 = vector.broadcast %124 : vector<1x256xf32> to vector<8x256xf32>
    %127 = arith.mulf %125, %126 : vector<8x256xf32>
    %128 = arith.addf %122, %127 : vector<8x256xf32>
    %129 = vector.extract_strided_slice %0 {offsets = [0, 21], sizes = [8, 1], strides = [1, 1]} : vector<8x36xf32> to vector<8x1xf32>
    %130 = vector.extract_strided_slice %1 {offsets = [21, 0], sizes = [1, 256], strides = [1, 1]} : vector<36x256xf32> to vector<1x256xf32>
    %131 = vector.broadcast %129 : vector<8x1xf32> to vector<8x256xf32>
    %132 = vector.broadcast %130 : vector<1x256xf32> to vector<8x256xf32>
    %133 = arith.mulf %131, %132 : vector<8x256xf32>
    %134 = arith.addf %128, %133 : vector<8x256xf32>
    %135 = vector.extract_strided_slice %0 {offsets = [0, 22], sizes = [8, 1], strides = [1, 1]} : vector<8x36xf32> to vector<8x1xf32>
    %136 = vector.extract_strided_slice %1 {offsets = [22, 0], sizes = [1, 256], strides = [1, 1]} : vector<36x256xf32> to vector<1x256xf32>
    %137 = vector.broadcast %135 : vector<8x1xf32> to vector<8x256xf32>
    %138 = vector.broadcast %136 : vector<1x256xf32> to vector<8x256xf32>
    %139 = arith.mulf %137, %138 : vector<8x256xf32>
    %140 = arith.addf %134, %139 : vector<8x256xf32>
    %141 = vector.extract_strided_slice %0 {offsets = [0, 23], sizes = [8, 1], strides = [1, 1]} : vector<8x36xf32> to vector<8x1xf32>
    %142 = vector.extract_strided_slice %1 {offsets = [23, 0], sizes = [1, 256], strides = [1, 1]} : vector<36x256xf32> to vector<1x256xf32>
    %143 = vector.broadcast %141 : vector<8x1xf32> to vector<8x256xf32>
    %144 = vector.broadcast %142 : vector<1x256xf32> to vector<8x256xf32>
    %145 = arith.mulf %143, %144 : vector<8x256xf32>
    %146 = arith.addf %140, %145 : vector<8x256xf32>
    %147 = vector.extract_strided_slice %0 {offsets = [0, 24], sizes = [8, 1], strides = [1, 1]} : vector<8x36xf32> to vector<8x1xf32>
    %148 = vector.extract_strided_slice %1 {offsets = [24, 0], sizes = [1, 256], strides = [1, 1]} : vector<36x256xf32> to vector<1x256xf32>
    %149 = vector.broadcast %147 : vector<8x1xf32> to vector<8x256xf32>
    %150 = vector.broadcast %148 : vector<1x256xf32> to vector<8x256xf32>
    %151 = arith.mulf %149, %150 : vector<8x256xf32>
    %152 = arith.addf %146, %151 : vector<8x256xf32>
    %153 = vector.extract_strided_slice %0 {offsets = [0, 25], sizes = [8, 1], strides = [1, 1]} : vector<8x36xf32> to vector<8x1xf32>
    %154 = vector.extract_strided_slice %1 {offsets = [25, 0], sizes = [1, 256], strides = [1, 1]} : vector<36x256xf32> to vector<1x256xf32>
    %155 = vector.broadcast %153 : vector<8x1xf32> to vector<8x256xf32>
    %156 = vector.broadcast %154 : vector<1x256xf32> to vector<8x256xf32>
    %157 = arith.mulf %155, %156 : vector<8x256xf32>
    %158 = arith.addf %152, %157 : vector<8x256xf32>
    %159 = vector.extract_strided_slice %0 {offsets = [0, 26], sizes = [8, 1], strides = [1, 1]} : vector<8x36xf32> to vector<8x1xf32>
    %160 = vector.extract_strided_slice %1 {offsets = [26, 0], sizes = [1, 256], strides = [1, 1]} : vector<36x256xf32> to vector<1x256xf32>
    %161 = vector.broadcast %159 : vector<8x1xf32> to vector<8x256xf32>
    %162 = vector.broadcast %160 : vector<1x256xf32> to vector<8x256xf32>
    %163 = arith.mulf %161, %162 : vector<8x256xf32>
    %164 = arith.addf %158, %163 : vector<8x256xf32>
    %165 = vector.extract_strided_slice %0 {offsets = [0, 27], sizes = [8, 1], strides = [1, 1]} : vector<8x36xf32> to vector<8x1xf32>
    %166 = vector.extract_strided_slice %1 {offsets = [27, 0], sizes = [1, 256], strides = [1, 1]} : vector<36x256xf32> to vector<1x256xf32>
    %167 = vector.broadcast %165 : vector<8x1xf32> to vector<8x256xf32>
    %168 = vector.broadcast %166 : vector<1x256xf32> to vector<8x256xf32>
    %169 = arith.mulf %167, %168 : vector<8x256xf32>
    %170 = arith.addf %164, %169 : vector<8x256xf32>
    %171 = vector.extract_strided_slice %0 {offsets = [0, 28], sizes = [8, 1], strides = [1, 1]} : vector<8x36xf32> to vector<8x1xf32>
    %172 = vector.extract_strided_slice %1 {offsets = [28, 0], sizes = [1, 256], strides = [1, 1]} : vector<36x256xf32> to vector<1x256xf32>
    %173 = vector.broadcast %171 : vector<8x1xf32> to vector<8x256xf32>
    %174 = vector.broadcast %172 : vector<1x256xf32> to vector<8x256xf32>
    %175 = arith.mulf %173, %174 : vector<8x256xf32>
    %176 = arith.addf %170, %175 : vector<8x256xf32>
    %177 = vector.extract_strided_slice %0 {offsets = [0, 29], sizes = [8, 1], strides = [1, 1]} : vector<8x36xf32> to vector<8x1xf32>
    %178 = vector.extract_strided_slice %1 {offsets = [29, 0], sizes = [1, 256], strides = [1, 1]} : vector<36x256xf32> to vector<1x256xf32>
    %179 = vector.broadcast %177 : vector<8x1xf32> to vector<8x256xf32>
    %180 = vector.broadcast %178 : vector<1x256xf32> to vector<8x256xf32>
    %181 = arith.mulf %179, %180 : vector<8x256xf32>
    %182 = arith.addf %176, %181 : vector<8x256xf32>
    %183 = vector.extract_strided_slice %0 {offsets = [0, 30], sizes = [8, 1], strides = [1, 1]} : vector<8x36xf32> to vector<8x1xf32>
    %184 = vector.extract_strided_slice %1 {offsets = [30, 0], sizes = [1, 256], strides = [1, 1]} : vector<36x256xf32> to vector<1x256xf32>
    %185 = vector.broadcast %183 : vector<8x1xf32> to vector<8x256xf32>
    %186 = vector.broadcast %184 : vector<1x256xf32> to vector<8x256xf32>
    %187 = arith.mulf %185, %186 : vector<8x256xf32>
    %188 = arith.addf %182, %187 : vector<8x256xf32>
    %189 = vector.extract_strided_slice %0 {offsets = [0, 31], sizes = [8, 1], strides = [1, 1]} : vector<8x36xf32> to vector<8x1xf32>
    %190 = vector.extract_strided_slice %1 {offsets = [31, 0], sizes = [1, 256], strides = [1, 1]} : vector<36x256xf32> to vector<1x256xf32>
    %191 = vector.broadcast %189 : vector<8x1xf32> to vector<8x256xf32>
    %192 = vector.broadcast %190 : vector<1x256xf32> to vector<8x256xf32>
    %193 = arith.mulf %191, %192 : vector<8x256xf32>
    %194 = arith.addf %188, %193 : vector<8x256xf32>
    %195 = vector.extract_strided_slice %0 {offsets = [0, 32], sizes = [8, 1], strides = [1, 1]} : vector<8x36xf32> to vector<8x1xf32>
    %196 = vector.extract_strided_slice %1 {offsets = [32, 0], sizes = [1, 256], strides = [1, 1]} : vector<36x256xf32> to vector<1x256xf32>
    %197 = vector.broadcast %195 : vector<8x1xf32> to vector<8x256xf32>
    %198 = vector.broadcast %196 : vector<1x256xf32> to vector<8x256xf32>
    %199 = arith.mulf %197, %198 : vector<8x256xf32>
    %200 = arith.addf %194, %199 : vector<8x256xf32>
    %201 = vector.extract_strided_slice %0 {offsets = [0, 33], sizes = [8, 1], strides = [1, 1]} : vector<8x36xf32> to vector<8x1xf32>
    %202 = vector.extract_strided_slice %1 {offsets = [33, 0], sizes = [1, 256], strides = [1, 1]} : vector<36x256xf32> to vector<1x256xf32>
    %203 = vector.broadcast %201 : vector<8x1xf32> to vector<8x256xf32>
    %204 = vector.broadcast %202 : vector<1x256xf32> to vector<8x256xf32>
    %205 = arith.mulf %203, %204 : vector<8x256xf32>
    %206 = arith.addf %200, %205 : vector<8x256xf32>
    %207 = vector.extract_strided_slice %0 {offsets = [0, 34], sizes = [8, 1], strides = [1, 1]} : vector<8x36xf32> to vector<8x1xf32>
    %208 = vector.extract_strided_slice %1 {offsets = [34, 0], sizes = [1, 256], strides = [1, 1]} : vector<36x256xf32> to vector<1x256xf32>
    %209 = vector.broadcast %207 : vector<8x1xf32> to vector<8x256xf32>
    %210 = vector.broadcast %208 : vector<1x256xf32> to vector<8x256xf32>
    %211 = arith.mulf %209, %210 : vector<8x256xf32>
    %212 = arith.addf %206, %211 : vector<8x256xf32>
    %213 = vector.extract_strided_slice %0 {offsets = [0, 35], sizes = [8, 1], strides = [1, 1]} : vector<8x36xf32> to vector<8x1xf32>
    %214 = vector.extract_strided_slice %1 {offsets = [35, 0], sizes = [1, 256], strides = [1, 1]} : vector<36x256xf32> to vector<1x256xf32>
    %215 = vector.broadcast %213 : vector<8x1xf32> to vector<8x256xf32>
    %216 = vector.broadcast %214 : vector<1x256xf32> to vector<8x256xf32>
    %217 = arith.mulf %215, %216 : vector<8x256xf32>
    %218 = arith.addf %212, %217 : vector<8x256xf32>
    %c0_3 = arith.constant 0 : index
    %c0_4 = arith.constant 0 : index
    %219 = vector.load %arg3[%c0_3, %c0_4] : memref<8x1xf32, #tpu.memory_space<vmem>>, vector<8x1xf32>
    %220 = vector.broadcast %219 : vector<8x1xf32> to vector<8x256xf32>
    %221 = arith.addf %218, %220 : vector<8x256xf32>
    %cst_5 = arith.constant 0.000000e+00 : f32
    %222 = vector.broadcast %cst_5 : f32 to vector<8x256xf32>
    %223 = arith.maximumf %221, %222 : vector<8x256xf32>
    %c0_6 = arith.constant 0 : index
    %c0_7 = arith.constant 0 : index
    %224 = vector.load %arg4[%c0_6, %c0_7] : memref<8x256xf32, #tpu.memory_space<vmem>>, vector<8x256xf32>
    tpu.vector_store %arg4[%c0_6, %c0_7], %223 {strides = array<i32>} : memref<8x256xf32, #tpu.memory_space<vmem>>, vector<8x256xf32>,
    return
  }
  func.func @transform_0(%arg0: i32) -> (i32, i32) {
    %c0_i32 = arith.constant 0 : i32
    %c0_i32_0 = arith.constant 0 : i32
    return %c0_i32, %arg0 : i32, i32
  }
  func.func @transform_1(%arg0: i32) -> (i32, i32) {
    %c0_i32 = arith.constant 0 : i32
    %c0_i32_0 = arith.constant 0 : i32
    %c0_i32_1 = arith.constant 0 : i32
    return %c0_i32, %c0_i32_0 : i32, i32
  }
  func.func @transform_2(%arg0: i32) -> (i32, i32) {
    %c0_i32 = arith.constant 0 : i32
    %c0_i32_0 = arith.constant 0 : i32
    %c0_i32_1 = arith.constant 0 : i32
    return %c0_i32, %c0_i32_0 : i32, i32
  }
  func.func @transform_3(%arg0: i32) -> (i32, i32) {
    %c0_i32 = arith.constant 0 : i32
    %c0_i32_0 = arith.constant 0 : i32
    return %c0_i32, %arg0 : i32, i32
  }
}

</mosaic_0001>

<bundles_post_ra>
// kernel: cond_conv_layer.1
= control target key start
LH: loop header
LB: loop body
LE: loop exit
PB: predicated region body
PF: predicated region fallthrough
CT: control target
= control target key end

     0   :  { %s849_s12 = smov 0   ;;  %s851_s13 = smov 0   ;;  %s1040_s0 = inlined_call_operand.vmem [shape: f32[36,512], index: 0, kind: input, shape index: {}]   ;;  %s1041_s1 = inlined_call_operand.vmem [shape: f32[8,36], index: 1, kind: input, shape index: {}]   ;;  %s1042_s2 = inlined_call_operand.vmem [shape: f32[8,1], index: 2, kind: input, shape index: {}]   ;;  %s1043_s3 = inlined_call_operand.vmem [shape: f32[8,512], index: 3, kind: output, shape index: {}]  }
   0x1   :  { %s853_s14 = smov 0  }
   0x2 LB: > { %s657_s15 = sadd.s32 4294967295, %s791_s14   ;;  %s866_s16 = sadd.s32 1, %s791_s14   ;;  %s791_s14 = sphi %s853_s14, %s1046_s14   ;;  %s787_s13 = sphi %s851_s13, %s1045_s13   ;;  %s783_s12 = sphi %s849_s12, %s1044_s12  }
   0x3   : > { %s17_s17 = ssub.s32 %s791_s14, %s866_s16  ;;  %s20_s18 = sadd.s32 1, %s787_s13 }
   0x4   : > { %p18_p0 = scmp.eq.s32.totalorder %s17_s17, 0  ;;  %p27_p1 = scmp.ne.s32.totalorder %s787_s13, %s783_s12 }
   0x5   : > { %p28_p2 = scmp.eq.s32.totalorder %s791_s14, 0  ;;  %p660_p4 = scmp.ge.s32.totalorder %s791_s14, 2 }
   0x6   : > { %s875_s19 = scalar_select %p18_p0, %s787_s13, %s20_s18  }
   0x7   : > { %p29_p3 = por %p28_p2, %p27_p1  ;;  %127 = sbr.rel (%p660_p4) target bundleno = 26 (0x1a), region = 24 }
   0xc   : > { %130 = sbr.rel (!%p29_p3) target bundleno = 26 (0x1a), region = 28  ;;  %s132_s20 = sand.u32 (%p29_p3), 1, %s787_s13  }
   0xd   : > { %s668_s21 = sshll.u32 (%p29_p3), %s791_s14, 4  ;;  %s669_s22 = smul.u32 (%p29_p3), 80, %s132_s20 }
   0xe   : > { %s137_s25 = scalar_lea.vmem (%p29_p3), %s1040_s0, %s668_s21 }
   0xf   : > { %v150_v0 = vld [vmem:[%s137_s25] sm:$0xff] (%p29_p3)  ;;  %v152_v1 = vld [vmem:[%s137_s25 + $0x8] sm:$0xff] (%p29_p3)  ;;  %s134_s26 = scalar_lea.vmem (%p29_p3), [#allocation2], %s669_s22 }
  0x10   : > { %v154_v2 = vld [vmem:[%s137_s25 + $0x20] sm:$0xff] (%p29_p3)  ;;  %151 = vst [vmem:[%s134_s26] sm:$0xff] (%p29_p3), %v150_v0  ;;  %v156_v3 = vld [vmem:[%s137_s25 + $0x28] sm:$0xff] (%p29_p3) }
  0x11   : > { %153 = vst [vmem:[%s134_s26 + $0x8] sm:$0xff] %v152_v1  ;;  %v158_v4 = vld [vmem:[%s137_s25 + $0x40] sm:$0xff]  ;;  %v160_v5 = vld [vmem:[%s137_s25 + $0x48] sm:$0xff] }
  0x12   : > { %155 = vst [vmem:[%s134_s26 + $0x10] sm:$0xff] %v154_v2  ;;  %v162_v6 = vld [vmem:[%s137_s25 + $0x60] sm:$0xff]  ;;  %v164_v7 = vld [vmem:[%s137_s25 + $0x68] sm:$0xff] }
  0x13   : > { %157 = vst [vmem:[%s134_s26 + $0x18] sm:$0xff] %v156_v3  ;;  %v166_v8 = vld [vmem:[%s137_s25 + $0x80] sm:$0xff]  ;;  %v168_v9 = vld [vmem:[%s137_s25 + $0x88] sm:$0xff] }
  0x14   : > { %159 = vst [vmem:[%s134_s26 + $0x20] sm:$0xff] %v158_v4 }
  0x15   : > { %161 = vst [vmem:[%s134_s26 + $0x28] sm:$0xff] %v160_v5 }
  0x16   : > { %163 = vst [vmem:[%s134_s26 + $0x30] sm:$0xff] %v162_v6 }
  0x17   : > { %165 = vst [vmem:[%s134_s26 + $0x38] sm:$0xff] %v164_v7 }
  0x18   : > { %167 = vst [vmem:[%s134_s26 + $0x40] sm:$0xff] %v166_v8 }
  0x19   : > { %169 = vst [vmem:[%s134_s26 + $0x48] sm:$0xff] %v168_v9 }
  0x1a PF: > { %p663_p5 = scmp.ge.s32.totalorder %s791_s14, 1  ;;  %p174_p6 = scmp.lt.s32.totalorder %s791_s14, 3 }
  0x1c   : > { %p175_p7 = pnand %p663_p5, %p174_p6 }
  0x1d   : > { %s181_s29 = sand.u32 (!%p175_p7), 1, %s783_s12   ;;  %s664_s7 = sshll.u32 (!%p175_p7), %s657_s15, 1 }
  0x1e   : > { %178 = sbr.rel (%p175_p7) target bundleno = 284 (0x11c), region = 51  ;;  %p206_p8 = scmp.lt.s32.totalorder (!%p175_p7), %s664_s7, 3 }
  0x1f   : > { %s670_s30 = smul.u32 (!%p175_p7), 80, %s181_s29 }
  0x21   : > { %s927_s4 = scalar_lea.vmem (!%p175_p7), [#allocation2], %s670_s30 }
  0x23   : > { %v888_v10 = vld [vmem:[%s1041_s1] sm:$0xff]  ;;  %v793_v11 = vmov 2   ;;  %v794_v12 = vmov 0   ;;  %v795_v13 = vmov 4   ;;  %v796_v14 = vmov 3   ;;  %v933_v51 = vld [vmem:[%s927_s4 + $0x8] sm:$0xff] }
  0x24   : > { %733 = vset.pattern.permute.xlu1 %v793_v11  ;;  %731 = vset.pattern.permute.xlu0 %v794_v12  ;;  %v797_v15 = vmov 1   ;;  %v798_v16 = vmov 5   ;;  %v799_v17 = vmov 6   ;;  %v800_v18 = vmov 8   ;;  %v930_v50 = vld [vmem:[%s927_s4] sm:$0xff]  ;;  %s1048_s7 = smov (!%p206_p8, %s664_s7), 3 }
  0x25   : > { %244 = vperm.xlu1 %733, %v888_v10   ;;  %224 = vperm.xlu0 %731, %v888_v10   ;;  %v801_v19 = vmov 7   ;;  %v802_v20 = vmov 9   ;;  %v803_v21 = vmov 13   ;;  %v804_v22 = vmov 10   ;;  %v583_v0 = vld [vmem:[%s1042_s2] sm:$0xff]  ;;  %s665_s8 = sshll.u32 %s1048_s7, 3 }
  0x26   : > { %735 = vset.pattern.permute.xlu2 %v795_v13  ;;  %v805_v23 = vmov 11   ;;  %v806_v24 = vmov 18   ;;  %v807_v25 = vmov 12   ;;  %v808_v26 = vmov 14   ;;  %s209_s11 = scalar_lea.vmem %s1043_s3, %s665_s8 }
  0x27   : > { %264 = vperm.xlu2 %735, %v888_v10   ;;  %v809_v27 = vmov 23   ;;  %v810_v28 = vmov 15   ;;  %v811_v29 = vmov 16   ;;  %v812_v30 = vmov 17  }
  0x28   : > { %v813_v31 = vmov 28   ;;  %v814_v32 = vmov 19   ;;  %v815_v33 = vmov 20   ;;  %v816_v34 = vmov 21  }
  0x29   : > { %v817_v35 = vmov 22   ;;  %v818_v36 = vmov 33   ;;  %v819_v37 = vmov 24   ;;  %v820_v38 = vmov 25  }
  0x2a   : > { %v821_v39 = vmov 26   ;;  %v822_v40 = vmov 27   ;;  %v823_v41 = vmov 29   ;;  %v824_v42 = vmov 30  }
  0x2b   : > { %v825_v44 = vmov 31   ;;  %v826_v45 = vmov 32   ;;  %v827_v49 = vmov 34   ;;  %v227_v52 = vperm.slane %v930_v50, 0 }
  0x2c   : > { %v228_v53 = vperm.slane %v933_v51, 0  ;;  %v828_v54 = vmov 35   ;;  %v237_v55 = vperm.slane %v930_v50, 1  ;;  %v238_v56 = vperm.slane %v933_v51, 1 }
  0x2d   : > { %734 = vset.pattern.permute.xlu1 %v796_v14  ;;  %732 = vset.pattern.permute.xlu0 %v797_v15  ;;  %v247_v60 = vperm.slane %v930_v50, 2  ;;  %v248_v61 = vperm.slane %v933_v51, 2  ;;  %v257_v7 = vperm.slane %v930_v50, 3  ;;  %v258_v8 = vperm.slane %v933_v51, 3 }
  0x2e   : > { %254 = vperm.xlu1 %734, %v888_v10   ;;  %234 = vperm.xlu0 %732, %v888_v10   ;;  %v267_v11 = vperm.slane %v930_v50, 4  ;;  %v268_v13 = vperm.slane %v933_v51, 4 }
  0x2f   : > { %736 = vset.pattern.permute.xlu2 %v798_v16 }
  0x30   : > { %274 = vperm.xlu2 %736, %v888_v10  }
  0x36   : > { %737 = vset.pattern.permute.xlu1 %v799_v17  ;;  %739 = vset.pattern.permute.xlu0 %v800_v18 }
  0x37   : > { %284 = vperm.xlu1 %737, %v888_v10   ;;  %304 = vperm.xlu0 %739, %v888_v10  }
  0x38   : > { %738 = vset.pattern.permute.xlu2 %v801_v19 }
  0x39   : > { %294 = vperm.xlu2 %738, %v888_v10  }
  0x3f   : > { %740 = vset.pattern.permute.xlu1 %v802_v20  ;;  %744 = vset.pattern.permute.xlu0 %v803_v21  ;;  %v277_v21 = vperm.slane %v930_v50, 5 }
  0x40   : > { %314 = vperm.xlu1 %740, %v888_v10   ;;  %354 = vperm.xlu0 %744, %v888_v10  }
  0x41   : > { %741 = vset.pattern.permute.xlu2 %v804_v22  ;;  %v278_v22 = vperm.slane %v933_v51, 5 }
  0x42   : > { %324 = vperm.xlu2 %741, %v888_v10  }
  0x48   : > { %742 = vset.pattern.permute.xlu1 %v805_v23  ;;  %749 = vset.pattern.permute.xlu0 %v806_v24 }
  0x49   : > { %334 = vperm.xlu1 %742, %v888_v10   ;;  %404 = vperm.xlu0 %749, %v888_v10  }
  0x4a   : > { %743 = vset.pattern.permute.xlu2 %v807_v25  ;;  %v287_v25 = vperm.slane %v930_v50, 6 }
  0x4b   : > { %344 = vperm.xlu2 %743, %v888_v10  }
  0x51   : > { %745 = vset.pattern.permute.xlu1 %v808_v26  ;;  %754 = vset.pattern.permute.xlu0 %v809_v27  ;;  %v288_v26 = vperm.slane %v933_v51, 6 }
  0x52   : > { %364 = vperm.xlu1 %745, %v888_v10   ;;  %454 = vperm.xlu0 %754, %v888_v10  }
  0x53   : > { %746 = vset.pattern.permute.xlu2 %v810_v28 }
  0x54   : > { %374 = vperm.xlu2 %746, %v888_v10  }
  0x5a   : > { %747 = vset.pattern.permute.xlu1 %v811_v29  ;;  %759 = vset.pattern.permute.xlu0 %v813_v31  ;;  %v297_v29 = vperm.slane %v930_v50, 7 }
  0x5b   : > { %384 = vperm.xlu1 %747, %v888_v10   ;;  %504 = vperm.xlu0 %759, %v888_v10  }
  0x5c   : > { %748 = vset.pattern.permute.xlu2 %v812_v30  ;;  %v298_v30 = vperm.slane %v933_v51, 7 }
  0x5d   : > { %394 = vperm.xlu2 %748, %v888_v10  }
  0x63   : > { %750 = vset.pattern.permute.xlu1 %v814_v32  ;;  %764 = vset.pattern.permute.xlu0 %v818_v36  ;;  %v961_v36 = vld [vmem:[%s927_s4 + $0x18] sm:$0xff] }
  0x64   : > { %414 = vperm.xlu1 %750, %v888_v10   ;;  %554 = vperm.xlu0 %764, %v888_v10  }
  0x65   : > { %751 = vset.pattern.permute.xlu2 %v815_v33 }
  0x66   : > { %424 = vperm.xlu2 %751, %v888_v10  }
  0x6c   : > { %752 = vset.pattern.permute.xlu1 %v816_v34  ;;  %768 = vset.pattern.permute.xlu0 %v794_v12 }
  0x6d   : > { %434 = vperm.xlu1 %752, %v888_v10  }
  0x6e   : > { %753 = vset.pattern.permute.xlu2 %v817_v35  ;;  %v958_v35 = vld [vmem:[%s927_s4 + $0x10] sm:$0xff] }
  0x6f   : > { %444 = vperm.xlu2 %753, %v888_v10  }
  0x75   : > { %755 = vset.pattern.permute.xlu1 %v819_v37 }
  0x76   : > { %464 = vperm.xlu1 %755, %v888_v10  }
  0x77   : > { %756 = vset.pattern.permute.xlu2 %v820_v38 }
  0x78   : > { %474 = vperm.xlu2 %756, %v888_v10  }
  0x7e   : > { %757 = vset.pattern.permute.xlu1 %v821_v39  ;;  %v307_v39 = vperm.slane %v958_v35, 0 }
  0x7f   : > { %484 = vperm.xlu1 %757, %v888_v10  }
  0x80   : > { %758 = vset.pattern.permute.xlu2 %v822_v40  ;;  %v308_v40 = vperm.slane %v961_v36, 0 }
  0x81   : > { %494 = vperm.xlu2 %758, %v888_v10   ;;  %v265_v43 = vpop.permute.xlu2 %264 }
  0x82   : > { %v269_v19 = vmul.f32 %v267_v11, %v265_v43  ;;  %v270_v20 = vmul.f32 %v268_v13, %v265_v43 }
  0x87   : > { %760 = vset.pattern.permute.xlu1 %v823_v41 }
  0x88   : > { %514 = vperm.xlu1 %760, %v888_v10  }
  0x89   : > { %761 = vset.pattern.permute.xlu2 %v824_v42 }
  0x8a   : > { %524 = vperm.xlu2 %761, %v888_v10   ;;  %v275_v46 = vpop.permute.xlu2 %274 }
  0x8b   : > { %v279_v27 = vmul.f32 %v277_v21, %v275_v46  ;;  %v280_v28 = vmul.f32 %v278_v22, %v275_v46  ;;  %v317_v46 = vperm.slane %v958_v35, 1 }
  0x90   : > { %762 = vset.pattern.permute.xlu1 %v825_v44 }
  0x91   : > { %534 = vperm.xlu1 %762, %v888_v10  }
  0x92   : > { %763 = vset.pattern.permute.xlu2 %v826_v45 }
  0x93   : > { %544 = vperm.xlu2 %763, %v888_v10   ;;  %v295_v59 = vpop.permute.xlu2 %294 }
  0x94   : > { %v299_v43 = vmul.f32 %v297_v29, %v295_v59  ;;  %v300_v44 = vmul.f32 %v298_v30, %v295_v59  ;;  %v337_v59 = vperm.slane %v958_v35, 3 }
  0x97   : > { %v245_v47 = vpop.permute.xlu1 %244  ;;  %v225_v48 = vpop.permute.xlu0 %224 }
  0x98   : > { %v229_v57 = vmul.f32 %v227_v52, %v225_v48  ;;  %v230_v58 = vmul.f32 %v228_v53, %v225_v48  ;;  %v249_v5 = vmul.f32 %v247_v60, %v245_v47  ;;  %v250_v6 = vmul.f32 %v248_v61, %v245_v47 }
  0x99   : > { %765 = vset.pattern.permute.xlu1 %v827_v49  ;;  %v318_v47 = vperm.slane %v961_v36, 1  ;;  %v338_v61 = vperm.slane %v961_v36, 3 }
  0x9a   : > { %564 = vperm.xlu1 %765, %v888_v10  }
  0x9b   : > { %766 = vset.pattern.permute.xlu2 %v828_v54 }
  0x9c   : > { %574 = vperm.xlu2 %766, %v888_v10   ;;  %v325_v17 = vpop.permute.xlu2 %324 }
  0xa0   : > { %v255_v62 = vpop.permute.xlu1 %254  ;;  %v235_v63 = vpop.permute.xlu0 %234 }
  0xa1   : > { %v239_v1 = vmul.f32 %v237_v55, %v235_v63  ;;  %v240_v2 = vmul.f32 %v238_v56, %v235_v63  ;;  %v259_v14 = vmul.f32 %v257_v7, %v255_v62  ;;  %v260_v15 = vmul.f32 %v258_v8, %v255_v62 }
  0xa2   : > { %767 = vset.pattern.permute.xlu1 %v794_v12  ;;  %v327_v55 = vperm.slane %v958_v35, 2  ;;  %v328_v56 = vperm.slane %v961_v36, 2 }
  0xa3   : > { %v241_v3 = vadd.f32 %v239_v1, %v229_v57  ;;  %v242_v4 = vadd.f32 %v240_v2, %v230_v58  ;;  %586 = vperm.xlu1 %767, %v583_v0  }
  0xa4   : > { %v329_v0 = vmul.f32 %v327_v55, %v325_v17  ;;  %v330_v1 = vmul.f32 %v328_v56, %v325_v17 }
  0xa5   : > { %v251_v9 = vadd.f32 %v249_v5, %v241_v3  ;;  %v252_v10 = vadd.f32 %v250_v6, %v242_v4  ;;  %v345_v38 = vpop.permute.xlu2 %344  ;;  %v347_v4 = vperm.slane %v958_v35, 4  ;;  %v348_v5 = vperm.slane %v961_v36, 4 }
  0xa7   : > { %v261_v12 = vadd.f32 %v259_v14, %v251_v9  ;;  %v262_v18 = vadd.f32 %v260_v15, %v252_v10  ;;  %v357_v9 = vperm.slane %v958_v35, 5  ;;  %v358_v10 = vperm.slane %v961_v36, 5 }
  0xa8   : > { %v349_v14 = vmul.f32 %v347_v4, %v345_v38  ;;  %v350_v15 = vmul.f32 %v348_v5, %v345_v38 }
  0xa9   : > { %v285_v16 = vpop.permute.xlu1 %284  ;;  %v271_v23 = vadd.f32 %v269_v19, %v261_v12  ;;  %v272_v24 = vadd.f32 %v270_v20, %v262_v18  ;;  %v305_v45 = vpop.permute.xlu0 %304  ;;  %v367_v12 = vperm.slane %v958_v35, 6  ;;  %v368_v18 = vperm.slane %v961_v36, 6 }
  0xaa   : > { %v289_v33 = vmul.f32 %v287_v25, %v285_v16  ;;  %v290_v34 = vmul.f32 %v288_v26, %v285_v16  ;;  %v309_v50 = vmul.f32 %v307_v39, %v305_v45  ;;  %v310_v51 = vmul.f32 %v308_v40, %v305_v45 }
  0xab   : > { %v281_v31 = vadd.f32 %v279_v27, %v271_v23  ;;  %v282_v32 = vadd.f32 %v280_v28, %v272_v24  ;;  %v978_v23 = vld [vmem:[%s927_s4 + $0x20] sm:$0xff]  ;;  %v981_v24 = vld [vmem:[%s927_s4 + $0x28] sm:$0xff]  ;;  %v377_v27 = vperm.slane %v958_v35, 7  ;;  %v378_v28 = vperm.slane %v961_v36, 7 }
  0xac   : > { %v398_v35 = vperm.slane %v981_v24, 1  ;;  %v407_v45 = vperm.slane %v978_v23, 2 }
  0xad   : > { %v291_v41 = vadd.f32 %v289_v33, %v281_v31  ;;  %v292_v42 = vadd.f32 %v290_v34, %v282_v32  ;;  %v387_v32 = vperm.slane %v978_v23, 0  ;;  %v388_v33 = vperm.slane %v981_v24, 0 }
  0xae   : > { %v375_v57 = vpop.permute.xlu2 %374 }
  0xaf   : > { %v301_v48 = vadd.f32 %v299_v43, %v291_v41  ;;  %v302_v49 = vadd.f32 %v300_v44, %v292_v42  ;;  %v379_v38 = vmul.f32 %v377_v27, %v375_v57  ;;  %v380_v39 = vmul.f32 %v378_v28, %v375_v57 }
  0xb0   : > { %v397_v43 = vperm.slane %v978_v23, 1 }
  0xb1   : > { %v311_v58 = vadd.f32 %v309_v50, %v301_v48  ;;  %v312_v60 = vadd.f32 %v310_v51, %v302_v49 }
  0xb2   : > { %v315_v37 = vpop.permute.xlu1 %314  ;;  %v355_v16 = vpop.permute.xlu0 %354 }
  0xb3   : > { %v319_v53 = vmul.f32 %v317_v46, %v315_v37  ;;  %v320_v54 = vmul.f32 %v318_v47, %v315_v37  ;;  %v359_v21 = vmul.f32 %v357_v9, %v355_v16  ;;  %v360_v22 = vmul.f32 %v358_v10, %v355_v16 }
  0xb4   : > { %v408_v46 = vperm.slane %v981_v24, 2  ;;  %v457_v16 = vperm.slane %v978_v23, 7 }
  0xb5   : > { %v321_v62 = vadd.f32 %v319_v53, %v311_v58  ;;  %v322_v63 = vadd.f32 %v320_v54, %v312_v60  ;;  %v417_v53 = vperm.slane %v978_v23, 3  ;;  %v418_v54 = vperm.slane %v981_v24, 3 }
  0xb7   : > { %v331_v6 = vadd.f32 %v329_v0, %v321_v62  ;;  %v332_v7 = vadd.f32 %v330_v1, %v322_v63  ;;  %v395_v17 = vpop.permute.xlu2 %394  ;;  %v427_v62 = vperm.slane %v978_v23, 4  ;;  %v428_v63 = vperm.slane %v981_v24, 4 }
  0xb8   : > { %v399_v49 = vmul.f32 %v397_v43, %v395_v17  ;;  %v400_v50 = vmul.f32 %v398_v35, %v395_v17  ;;  %v458_v17 = vperm.slane %v981_v24, 7 }
  0xbb   : > { %v335_v52 = vpop.permute.xlu1 %334 }
  0xbc   : > { %v339_v2 = vmul.f32 %v337_v59, %v335_v52  ;;  %v340_v3 = vmul.f32 %v338_v61, %v335_v52  ;;  %v405_v52 = vpop.permute.xlu0 %404 }
  0xbd   : > { %v409_v57 = vmul.f32 %v407_v45, %v405_v52  ;;  %v410_v58 = vmul.f32 %v408_v46, %v405_v52 }
  0xbe   : > { %v341_v11 = vadd.f32 %v339_v2, %v331_v6  ;;  %v342_v13 = vadd.f32 %v340_v3, %v332_v7  ;;  %v437_v2 = vperm.slane %v978_v23, 5  ;;  %v438_v3 = vperm.slane %v981_v24, 5 }
  0xc0   : > { %v351_v19 = vadd.f32 %v349_v14, %v341_v11  ;;  %v352_v20 = vadd.f32 %v350_v15, %v342_v13  ;;  %v425_v40 = vpop.permute.xlu2 %424  ;;  %v447_v11 = vperm.slane %v978_v23, 6  ;;  %v448_v13 = vperm.slane %v981_v24, 6 }
  0xc1   : > { %v429_v7 = vmul.f32 %v427_v62, %v425_v40 }
  0xc2   : > { %v361_v30 = vadd.f32 %v359_v21, %v351_v19  ;;  %v362_v31 = vadd.f32 %v360_v22, %v352_v20 }
  0xc4   : > { %v365_v8 = vpop.permute.xlu1 %364 }
  0xc5   : > { %v369_v25 = vmul.f32 %v367_v12, %v365_v8  ;;  %v370_v26 = vmul.f32 %v368_v18, %v365_v8  ;;  %v430_v8 = vmul.f32 %v428_v63, %v425_v40  ;;  %v1002_v12 = vld [vmem:[%s927_s4 + $0x30] sm:$0xff]  ;;  %v1005_v18 = vld [vmem:[%s927_s4 + $0x38] sm:$0xff] }
  0xc6   : > { %v467_v28 = vperm.slane %v1002_v12, 0  ;;  %v487_v40 = vperm.slane %v1002_v12, 2  ;;  %v507_v52 = vperm.slane %v1002_v12, 4 }
  0xc7   : > { %v371_v34 = vadd.f32 %v369_v25, %v361_v30  ;;  %v372_v37 = vadd.f32 %v370_v26, %v362_v31  ;;  %v455_v26 = vpop.permute.xlu0 %454 }
  0xc8   : > { %v459_v23 = vmul.f32 %v457_v16, %v455_v26 }
  0xc9   : > { %v381_v44 = vadd.f32 %v379_v38, %v371_v34  ;;  %v382_v36 = vadd.f32 %v380_v39, %v372_v37  ;;  %v445_v60 = vpop.permute.xlu2 %444  ;;  %v477_v34 = vperm.slane %v1002_v12, 1  ;;  %v478_v37 = vperm.slane %v1005_v18, 1 }
  0xca   : > { %v449_v22 = vmul.f32 %v447_v11, %v445_v60  ;;  %v450_v25 = vmul.f32 %v448_v13, %v445_v60  ;;  %v517_v60 = vperm.slane %v1002_v12, 5  ;;  %v220_v11 = vld [vmem:[%s927_s4 + $0x40] sm:$0xf]  ;;  %v221_v13 = vld [vmem:[%s927_s4 + $0x48] sm:$0xf] }
  0xcd   : > { %v385_v29 = vpop.permute.xlu1 %384 }
  0xce   : > { %v389_v41 = vmul.f32 %v387_v32, %v385_v29  ;;  %v390_v42 = vmul.f32 %v388_v33, %v385_v29  ;;  %v468_v29 = vperm.slane %v1005_v18, 0  ;;  %v460_v32 = vmul.f32 %v458_v17, %v455_v26 }
  0xd0   : > { %v391_v47 = vadd.f32 %v389_v41, %v381_v44  ;;  %v392_v48 = vadd.f32 %v390_v42, %v382_v36  ;;  %v488_v41 = vperm.slane %v1005_v18, 2 }
  0xd2   : > { %v401_v55 = vadd.f32 %v399_v49, %v391_v47  ;;  %v402_v56 = vadd.f32 %v400_v50, %v392_v48  ;;  %v475_v19 = vpop.permute.xlu2 %474  ;;  %v497_v48 = vperm.slane %v1002_v12, 3  ;;  %v498_v49 = vperm.slane %v1005_v18, 3 }
  0xd3   : > { %v479_v44 = vmul.f32 %v477_v34, %v475_v19  ;;  %v480_v36 = vmul.f32 %v478_v37, %v475_v19  ;;  %v547_v19 = vperm.slane %v220_v11, 0 }
  0xd4   : > { %v411_v0 = vadd.f32 %v409_v57, %v401_v55  ;;  %v412_v1 = vadd.f32 %v410_v58, %v402_v56  ;;  %v505_v58 = vpop.permute.xlu0 %504 }
  0xd6   : > { %v415_v51 = vpop.permute.xlu1 %414 }
  0xd7   : > { %v419_v59 = vmul.f32 %v417_v53, %v415_v51  ;;  %v420_v61 = vmul.f32 %v418_v54, %v415_v51  ;;  %v508_v53 = vperm.slane %v1005_v18, 4 }
  0xd9   : > { %v421_v5 = vadd.f32 %v419_v59, %v411_v0  ;;  %v422_v6 = vadd.f32 %v420_v61, %v412_v1  ;;  %v518_v59 = vperm.slane %v1005_v18, 5  ;;  %v509_v0 = vmul.f32 %v507_v52, %v505_v58 }
  0xda   : > { %v510_v1 = vmul.f32 %v508_v53, %v505_v58 }
  0xdb   : > { %v431_v14 = vadd.f32 %v429_v7, %v421_v5  ;;  %v432_v15 = vadd.f32 %v430_v8, %v422_v6  ;;  %v495_v42 = vpop.permute.xlu2 %494  ;;  %v527_v5 = vperm.slane %v1002_v12, 6  ;;  %v528_v6 = vperm.slane %v1005_v18, 6 }
  0xdc   : > { %v499_v56 = vmul.f32 %v497_v48, %v495_v42  ;;  %v500_v57 = vmul.f32 %v498_v49, %v495_v42  ;;  %v578_v42 = vperm.slane %v221_v13, 3 }
  0xdf   : > { %v435_v4 = vpop.permute.xlu1 %434 }
  0xe0   : > { %v439_v9 = vmul.f32 %v437_v2, %v435_v4  ;;  %v440_v10 = vmul.f32 %v438_v3, %v435_v4 }
  0xe2   : > { %v441_v20 = vadd.f32 %v439_v9, %v431_v14  ;;  %v442_v21 = vadd.f32 %v440_v10, %v432_v15  ;;  %v537_v9 = vperm.slane %v1002_v12, 7  ;;  %v538_v10 = vperm.slane %v1005_v18, 7 }
  0xe4   : > { %v451_v30 = vadd.f32 %v449_v22, %v441_v20  ;;  %v452_v31 = vadd.f32 %v450_v25, %v442_v21  ;;  %v525_v61 = vpop.permute.xlu2 %524  ;;  %v548_v20 = vperm.slane %v221_v13, 0 }
  0xe5   : > { %v529_v16 = vmul.f32 %v527_v5, %v525_v61  ;;  %v530_v17 = vmul.f32 %v528_v6, %v525_v61 }
  0xe6   : > { %v461_v38 = vadd.f32 %v459_v23, %v451_v30  ;;  %v462_v39 = vadd.f32 %v460_v32, %v452_v31  ;;  %v558_v30 = vperm.slane %v221_v13, 1  ;;  %v555_v32 = vpop.permute.xlu0 %554 }
  0xe8   : > { %v465_v27 = vpop.permute.xlu1 %464 }
  0xe9   : > { %v469_v24 = vmul.f32 %v467_v28, %v465_v27  ;;  %v470_v33 = vmul.f32 %v468_v29, %v465_v27  ;;  %v557_v29 = vperm.slane %v220_v11, 1 }
  0xeb   : > { %v471_v43 = vadd.f32 %v469_v24, %v461_v38  ;;  %v472_v35 = vadd.f32 %v470_v33, %v462_v39  ;;  %v567_v24 = vperm.slane %v220_v11, 2  ;;  %v568_v33 = vperm.slane %v221_v13, 2 }
  0xec   : > { %v559_v38 = vmul.f32 %v557_v29, %v555_v32  ;;  %v560_v39 = vmul.f32 %v558_v30, %v555_v32 }
  0xed   : > { %v481_v50 = vadd.f32 %v479_v44, %v471_v43  ;;  %v482_v51 = vadd.f32 %v480_v36, %v472_v35  ;;  %v545_v22 = vpop.permute.xlu2 %544 }
  0xee   : > { %v549_v18 = vmul.f32 %v547_v19, %v545_v22  ;;  %v550_v23 = vmul.f32 %v548_v20, %v545_v22 }
  0xf1   : > { %v485_v45 = vpop.permute.xlu1 %484 }
  0xf2   : > { %v489_v46 = vmul.f32 %v487_v40, %v485_v45  ;;  %v490_v47 = vmul.f32 %v488_v41, %v485_v45  ;;  %v577_v41 = vperm.slane %v220_v11, 3 }
  0xf4   : > { %v491_v54 = vadd.f32 %v489_v46, %v481_v50  ;;  %v492_v55 = vadd.f32 %v490_v47, %v482_v51 }
  0xf6   : > { %v501_v62 = vadd.f32 %v499_v56, %v491_v54  ;;  %v502_v63 = vadd.f32 %v500_v57, %v492_v55  ;;  %v575_v44 = vpop.permute.xlu2 %574 }
  0xf7   : > { %v579_v48 = vmul.f32 %v577_v41, %v575_v44  ;;  %v580_v49 = vmul.f32 %v578_v42, %v575_v44 }
  0xf8   : > { %v511_v7 = vadd.f32 %v509_v0, %v501_v62  ;;  %v512_v8 = vadd.f32 %v510_v1, %v502_v63 }
  0xfa   : > { %v515_v2 = vpop.permute.xlu1 %514 }
  0xfb   : > { %v519_v3 = vmul.f32 %v517_v60, %v515_v2  ;;  %v520_v4 = vmul.f32 %v518_v59, %v515_v2 }
  0xfd   : > { %v521_v14 = vadd.f32 %v519_v3, %v511_v7  ;;  %v522_v15 = vadd.f32 %v520_v4, %v512_v8 }
  0xff   : > { %v531_v25 = vadd.f32 %v529_v16, %v521_v14  ;;  %v532_v26 = vadd.f32 %v530_v17, %v522_v15 }
 0x103   : > { %v535_v21 = vpop.permute.xlu1 %534 }
 0x104   : > { %v539_v27 = vmul.f32 %v537_v9, %v535_v21  ;;  %v540_v28 = vmul.f32 %v538_v10, %v535_v21 }
 0x106   : > { %v541_v12 = vadd.f32 %v539_v27, %v531_v25  ;;  %v542_v31 = vadd.f32 %v540_v28, %v532_v26 }
 0x108   : > { %v551_v34 = vadd.f32 %v549_v18, %v541_v12  ;;  %v552_v37 = vadd.f32 %v550_v23, %v542_v31 }
 0x10a   : > { %v561_v36 = vadd.f32 %v559_v38, %v551_v34  ;;  %v562_v45 = vadd.f32 %v560_v39, %v552_v37 }
 0x10c   : > { %v565_v40 = vpop.permute.xlu1 %564 }
 0x10d   : > { %v569_v43 = vmul.f32 %v567_v24, %v565_v40  ;;  %v570_v35 = vmul.f32 %v568_v33, %v565_v40 }
 0x10f   : > { %v571_v46 = vadd.f32 %v569_v43, %v561_v36  ;;  %v572_v47 = vadd.f32 %v570_v35, %v562_v45 }
 0x111   : > { %v581_v50 = vadd.f32 %v579_v48, %v571_v46  ;;  %v582_v51 = vadd.f32 %v580_v49, %v572_v47 }
 0x115   : > { %v587_v52 = vpop.permute.xlu1 %586 }
 0x116   : > { %v589_v53 = vadd.f32 %v587_v52, %v581_v50  ;;  %v590_v54 = vadd.f32 %v587_v52, %v582_v51 }
 0x118   : > { %v591_v55 = vmax.f32 %v589_v53, 0.0  ;;  %v592_v56 = vmax.f32 %v590_v54, 0.0 }
 0x11a   : > { %593 = vst [vmem:[%s209_s11] sm:$0xff] %v591_v55 }
 0x11b   : > { %594 = vst [vmem:[%s209_s11 + $0x8] sm:$0xff] %v592_v56 }
 0x11c PF: > { %p10_p9 = scmp.ge.s32.totalorder %s866_s16, 4   ;;  %s1044_s12 = smov %s787_s13 }
 0x11d   : > { %s1045_s13 = smov %s875_s19  ;;  %s1046_s14 = smov %s866_s16 }
 0x11e   :  { %12 = sbr.rel (!%p10_p9) target bundleno = 2 (0x2), region = 90 }

</bundles_post_ra>
